<compile_context>
chip_gen: v7x
topology: tpu7x:2x2x1
jax: 0.10.0
libtpu: 0.0.40
codegen_flags: <defaults>
</compile_context>

<pallas_src>
from functools import partial

import jax
import jax.numpy as jnp
from jax import lax
from jax.experimental import pallas as pl
from jax.experimental.pallas import tpu as pltpu

# ----------------------------- configuration -------------------------------
B = 2            # batch
CIN = 8          # in_channels
COUT = 4         # out_channels
H = W = 16       # input spatial
STRIDE = 2       # DecoderBlock stride (default)
BN_EPS = 1e-5


# ------------------------------ Pallas kernel -------------------------------
def fused_matmul_bn_relu_kernel(p_ref, w_ref, shift_ref, o_ref):
    """(R,K)@(K,M) MXU matmul + folded-BN shift + ReLU, single grid step.

    p_ref:     (K, M)  bf16 shared 3x3-tap patch matrix, K = Cin*9,
                       M = B*H*W (batch folded into the lane axis)
    w_ref:     (R, K)  bf16 per-(cout, phase) weights, BN scale pre-folded,
                       R = Cout*s*s (>= 8 sublanes)
    shift_ref: (R, 1)  f32 folded BN shift
    o_ref:     (R, M)  f32 lane-dense output slab
    """
    acc = jnp.dot(w_ref[...], p_ref[...],
                  preferred_element_type=jnp.float32)        # MXU
    o_ref[...] = jnp.maximum(acc + shift_ref[...], 0.0)      # BN shift + ReLU


def fused_matmul_bn_relu(patches, w_mat, shift):
    """Single fused pallas_call, one grid step, whole-array blocks."""
    k, m = patches.shape
    r = w_mat.shape[0]
    return pl.pallas_call(
        fused_matmul_bn_relu_kernel,
        out_shape=jax.ShapeDtypeStruct((r, m), jnp.float32),
        grid=(1,),
        in_specs=[
            pl.BlockSpec((k, m), lambda i: (0, 0)),
            pl.BlockSpec((r, k), lambda i: (0, 0)),
            pl.BlockSpec((r, 1), lambda i: (0, 0)),
        ],
        out_specs=pl.BlockSpec((r, m), lambda i: (0, 0)),
        compiler_params=pltpu.CompilerParams(
            dimension_semantics=("arbitrary",)),
    )(patches, w_mat, shift)


# --------------------------- wrapper-side layout -----------------------------
def build_patches(x):
    """Shared 3x3-tap patch matrix of the 1-padded raw input.

    x: (B, Cin, H, W)  ->  (Cin*9, B*H*W) bf16, output-spatial lane-dense.
    Column index = cin*9 + a*3 + c where tap (a, c) reads x_pad[oi+a, oj+c].
    No zero-stuffing, no upsampling -- every row is real data.
    """
    b, cin, h, w = x.shape
    xb = x.astype(jnp.bfloat16)
    xp = jnp.pad(xb, ((0, 0), (0, 0), (1, 1), (1, 1)))       # (B,Cin,H+2,W+2)
    xp = xp.transpose(1, 0, 2, 3)                            # (Cin,B,H+2,W+2)
    taps = [xp[:, :, a:a + h, c:c + w]
            for a in range(3) for c in range(3)]             # 9 x (Cin,B,H,W)
    p = jnp.stack(taps, axis=1)                              # (Cin,9,B,H,W)
    return p.reshape(cin * 9, b * h * w)


def deconv_phase_weights(w_t, stride):
    """ConvTranspose2d(k=2s, stride=s, pad=s//2) -> per-phase 2x2-tap weights
    embedded in the shared 3x3 tap basis.

    w_t: (Cin, Cout, 2s, 2s)  ->  (Cout*s*s, Cin*9), row order (cout, ph, pw).
    Output pixel (s*oi+ph, s*oj+pw) only receives the 2x2 taps
    x_pad[oi+a, oj+c], a in {q_ph, q_ph+1}, c in {q_pw, q_pw+1}.
    """
    cin, cout, _, _ = w_t.shape
    s = stride
    p = s // 2
    w9 = jnp.zeros((cout, s, s, cin, 3, 3), jnp.float32)
    for ph in range(s):
        qh, rh = (ph + p) // s, (ph + p) % s
        for pw in range(s):
            qw, rw = (pw + p) // s, (pw + p) % s
            for a in (qh, qh + 1):
                kh = rh + s * (qh + 1 - a)
                for c in (qw, qw + 1):
                    kw = rw + s * (qw + 1 - c)
                    w9 = w9.at[:, ph, pw, :, a, c].set(
                        w_t[:, :, kh, kw].astype(jnp.float32).T)
    return w9.reshape(cout * s * s, cin * 9)


def upsample_conv_phase_weights(w_c, stride):
    """Upsample(nearest, s) + Conv2d(3x3, pad=1) folded into per-phase weights
    acting directly on the ORIGINAL (un-upsampled) 1-padded input.

    w_c: (Cout, Cin, 3, 3)  ->  (Cout*s*s, Cin*9), row order (cout, ph, pw).
    Nearest upsampling maps conv tap kh at output phase ph to input offset
    floor((ph + kh - 1)/s); duplicated taps have their weights summed.
    """
    cout, cin, _, _ = w_c.shape
    s = stride
    w9 = jnp.zeros((cout, s, s, cin, 3, 3), jnp.float32)
    for ph in range(s):
        for pw in range(s):
            for kh in range(3):
                a = (ph + kh - 1) // s + 1
                for kw in range(3):
                    c = (pw + kw - 1) // s + 1
                    w9 = w9.at[:, ph, pw, :, a, c].add(
                        w_c[:, :, kh, kw].astype(jnp.float32))
    return w9.reshape(cout * s * s, cin * 9)


def decoder_block_forward(x, weight, bn_params,
                          upsample_with_interpolation=False, stride=2):
    """Forward of DecoderBlock.block (inference). (B,Cin,H,W)->(B,Cout,sH,sW).

    # TODO(synk): the module's forward ignores its argument, reads self.storage
    # and pushes the result to self.edges via store_result (returning None);
    # that host-side graph plumbing has no kernel equivalent -- this wrapper
    # takes x directly and returns the block output.
    # TODO(synk): eval-mode BatchNorm only (running stats folded into the
    # matmul); training-mode batch statistics are not implemented.
    """
    b, cin, h, w = x.shape
    s = stride
    if upsample_with_interpolation:
        cout = weight.shape[0]
        w9 = upsample_conv_phase_weights(weight, s)
    else:
        # TODO(synk): odd strides (output s*H+1, phases don't tile) unsupported.
        assert s % 2 == 0, "phase decomposition assumes even stride"
        cout = weight.shape[1]
        w9 = deconv_phase_weights(weight, s)

    gamma, beta, mean, var = bn_params
    scale = gamma / jnp.sqrt(var + BN_EPS)                    # (Cout,)
    shift = beta - mean * scale                               # (Cout,)
    row_scale = jnp.repeat(scale, s * s)                      # (Cout*s*s,)
    row_shift = jnp.repeat(shift, s * s)[:, None].astype(jnp.float32)
    w_mat = (w9 * row_scale[:, None]).astype(jnp.bfloat16)    # fold BN scale

    patches = build_patches(x)                                # (Cin*9, B*H*W)
    out = fused_matmul_bn_relu(patches, w_mat, row_shift)     # (Cout*s*s, BHW)

    # Pixel shuffle back to (B, Cout, s*H, s*W): one small wrapper transpose.
    out = out.reshape(cout, s, s, b, h, w).transpose(3, 0, 4, 1, 5, 2)
    return out.reshape(b, cout, s * h, s * w)


decoder_block_fn = jax.jit(
    decoder_block_forward,
    static_argnames=("upsample_with_interpolation", "stride"))


# -------------------------------- references ---------------------------------
def reference_deconv(x, w_t, stride):
    """Direct ConvTranspose2d (scatter formulation, f32, HIGHEST precision)."""
    b, cin, h, w = x.shape
    k = 2 * stride
    p = stride // 2
    cout = w_t.shape[1]
    full = jnp.zeros((b, cout, stride * (h - 1) + k, stride * (w - 1) + k),
                     jnp.float32)
    for kh in range(k):
        for kw in range(k):
            contrib = jnp.einsum('bchw,cf->bfhw', x, w_t[:, :, kh, kw],
                                 precision=lax.Precision.HIGHEST)
            full = full.at[:, :, kh:kh + stride * (h - 1) + 1:stride,
                                 kw:kw + stride * (w - 1) + 1:stride].add(contrib)
    return full[:, :, p:p + stride * h, p:p + stride * w]


def reference_upsample_conv(x, w_c, stride):
    xu = jnp.repeat(jnp.repeat(x, stride, axis=2), stride, axis=3)
    return lax.conv_general_dilated(
        xu, w_c, window_strides=(1, 1), padding=((1, 1), (1, 1)),
        dimension_numbers=('NCHW', 'OIHW', 'NCHW'),
        precision=lax.Precision.HIGHEST)


def reference_bn_relu(y, bn_params, eps=BN_EPS):
    gamma, beta, mean, var = bn_params
    yn = (y - mean[None, :, None, None]) * lax.rsqrt(var[None, :, None, None] + eps)
    return jnp.maximum(yn * gamma[None, :, None, None] + beta[None, :, None, None],
                       0.0)


# ----------------------------------- main ------------------------------------
if __name__ == "__main__":
    key = jax.random.PRNGKey(0)
    kx, kw1, kw2, kg, kb, km, kv = jax.random.split(key, 7)

    x = jax.random.normal(kx, (B, CIN, H, W), jnp.float32)

    # ConvTranspose2d weight: (in_channels, out_channels, 2*stride, 2*stride)
    w_t = jax.random.normal(kw1, (CIN, COUT, 2 * STRIDE, 2 * STRIDE),
                            jnp.float32) * 0.1
    # Conv2d weight (interpolation branch): (out_channels, in_channels, 3, 3)
    w_c = jax.random.normal(kw2, (COUT, CIN, 3, 3), jnp.float32) * 0.1

    gamma = 1.0 + 0.1 * jax.random.normal(kg, (COUT,), jnp.float32)
    beta = 0.1 * jax.random.normal(kb, (COUT,), jnp.float32)
    running_mean = 0.1 * jax.random.normal(km, (COUT,), jnp.float32)
    running_var = jax.random.uniform(kv, (COUT,), jnp.float32, 0.5, 1.5)
    bn_params = (gamma, beta, running_mean, running_var)

    OH, OW = H * STRIDE, W * STRIDE

    # --- default branch: ConvTranspose2d -> BatchNorm2d -> ReLU ---
    out_t = jax.block_until_ready(decoder_block_fn(
        x, w_t, bn_params, upsample_with_interpolation=False, stride=STRIDE))
    ref_t = reference_bn_relu(reference_deconv(x, w_t, STRIDE), bn_params)
    assert out_t.shape == (B, COUT, OH, OW)
    assert jnp.allclose(out_t, ref_t, atol=2e-2, rtol=2e-2), \
        "ConvTranspose branch mismatch vs reference"

    # --- interpolation branch: Upsample(nearest) -> Conv3x3 -> BN -> ReLU ---
    out_u = jax.block_until_ready(decoder_block_fn(
        x, w_c, bn_params, upsample_with_interpolation=True, stride=STRIDE))
    ref_u = reference_bn_relu(reference_upsample_conv(x, w_c, STRIDE), bn_params)
    assert out_u.shape == (B, COUT, OH, OW)
    assert jnp.allclose(out_u, ref_u, atol=2e-2, rtol=2e-2), \
        "Upsample branch mismatch vs reference"

    print("KERNEL_OK")
</pallas_src>

<mosaic_0001>
module attributes {stable_mosaic.version = 11 : i64} {
  func.func @fused_matmul_bn_relu_kernel(%arg0: i32, %arg1: memref<72x512xbf16, #tpu.memory_space<vmem>>, %arg2: memref<16x72xbf16, #tpu.memory_space<vmem>>, %arg3: memref<16x1xf32, #tpu.memory_space<vmem>>, %arg4: memref<16x512xf32, #tpu.memory_space<vmem>>) attributes {dimension_semantics = [#tpu.dimension_semantics<arbitrary>], iteration_bounds = array<i64: 1>, scalar_prefetch = 0 : i64, scratch_operands = 0 : i64, tpu.core_type = #tpu.core_type<tc>, window_params = [{pipeline_mode = #tpu.pipeline_mode<synchronous>, transform_indices = @transform_0, window_bounds = array<i64: 72, 512>}, {pipeline_mode = #tpu.pipeline_mode<synchronous>, transform_indices = @transform_1, window_bounds = array<i64: 16, 72>}, {pipeline_mode = #tpu.pipeline_mode<synchronous>, transform_indices = @transform_2, window_bounds = array<i64: 16, 1>}, {pipeline_mode = #tpu.pipeline_mode<synchronous>, transform_indices = @transform_3, window_bounds = array<i64: 16, 512>}]} {
    %c0 = arith.constant 0 : index
    %c0_0 = arith.constant 0 : index
    %0 = vector.load %arg2[%c0, %c0_0] : memref<16x72xbf16, #tpu.memory_space<vmem>>, vector<16x72xbf16>
    %c0_1 = arith.constant 0 : index
    %c0_2 = arith.constant 0 : index
    %1 = vector.load %arg1[%c0_1, %c0_2] : memref<72x512xbf16, #tpu.memory_space<vmem>>, vector<72x512xbf16>
    %cst = arith.constant dense<0.000000e+00> : vector<16x512xf32>
    %2 = tpu.matmul %0, %1, %cst {dimension_numbers = #tpu.dot_dimension_numbers<[1], [0], [0], [1], [0, 0, 1, 1], [], []>} : vector<16x72xbf16>, vector<72x512xbf16>, vector<16x512xf32> -> vector<16x512xf32>
    %c0_3 = arith.constant 0 : index
    %c0_4 = arith.constant 0 : index
    %3 = vector.load %arg3[%c0_3, %c0_4] : memref<16x1xf32, #tpu.memory_space<vmem>>, vector<16x1xf32>
    %4 = vector.broadcast %3 : vector<16x1xf32> to vector<16x512xf32>
    %5 = arith.addf %2, %4 : vector<16x512xf32>
    %cst_5 = arith.constant 0.000000e+00 : f32
    %6 = vector.broadcast %cst_5 : f32 to vector<16x512xf32>
    %7 = arith.maximumf %5, %6 : vector<16x512xf32>
    %c0_6 = arith.constant 0 : index
    %c0_7 = arith.constant 0 : index
    %8 = vector.load %arg4[%c0_6, %c0_7] : memref<16x512xf32, #tpu.memory_space<vmem>>, vector<16x512xf32>
    tpu.vector_store %arg4[%c0_6, %c0_7], %7 {strides = array<i32>} : memref<16x512xf32, #tpu.memory_space<vmem>>, vector<16x512xf32>,
    return
  }
  func.func @transform_0(%arg0: i32) -> (i32, i32) {
    %c0_i32 = arith.constant 0 : i32
    %c0_i32_0 = arith.constant 0 : i32
    %c0_i32_1 = arith.constant 0 : i32
    return %c0_i32, %c0_i32_0 : i32, i32
  }
  func.func @transform_1(%arg0: i32) -> (i32, i32) {
    %c0_i32 = arith.constant 0 : i32
    %c0_i32_0 = arith.constant 0 : i32
    %c0_i32_1 = arith.constant 0 : i32
    return %c0_i32, %c0_i32_0 : i32, i32
  }
  func.func @transform_2(%arg0: i32) -> (i32, i32) {
    %c0_i32 = arith.constant 0 : i32
    %c0_i32_0 = arith.constant 0 : i32
    %c0_i32_1 = arith.constant 0 : i32
    return %c0_i32, %c0_i32_0 : i32, i32
  }
  func.func @transform_3(%arg0: i32) -> (i32, i32) {
    %c0_i32 = arith.constant 0 : i32
    %c0_i32_0 = arith.constant 0 : i32
    %c0_i32_1 = arith.constant 0 : i32
    return %c0_i32, %c0_i32_0 : i32, i32
  }
}

</mosaic_0001>

<bundles_post_ra>
// kernel: mul.7
= control target key start
LH: loop header
LB: loop body
LE: loop exit
PB: predicated region body
PF: predicated region fallthrough
CT: control target
= control target key end

     0   :  { %vm7_vm0 = vcmask 31744   ;;  %s37_s8 = smov 4   ;;  %s38_s9 = smov 8   ;;  %vm13_vm1 = vcmask 130144   ;;  %vm19_vm2 = vcmask 97344   ;;  %vm25_vm3 = vcmask 64544   ;;  %s55_s0 = inlined_call_operand.vmem [shape: f32[4,4], index: 0, kind: input, shape index: {}]   ;;  %s56_s1 = inlined_call_operand.vmem [shape: f32[16], index: 1, kind: output, shape index: {}]  }
   0x1   :  { %v4_v0 = vld [vmem:[%s55_s0] sm:$0xf]  ;;  %s36_s0 = smov 12  }
   0x2   :  { %5 = vst [vmem:[#allocation1] sm:$0xf] %v4_v0 }
   0x9   :  { %v10_v1 = vld [vmem:[#allocation1 + $0x3] sm:$0x1]   ;;  %v22_v2 = vld [vmem:[#allocation1 + $0x1] sm:$0x1]   ;;  %v6_v3 = vld [vmem:[#allocation1] sm:$0x1]  }
   0xa   :  { %11 = vrot.lane.b32.xlu0 %v10_v1, %s36_s0  ;;  %23 = vrot.lane.b32.xlu1 %v22_v2, %s37_s8  ;;  %v16_v4 = vld [vmem:[#allocation1 + $0x2] sm:$0x1]   ;;  %8 = vst.msk [vmem:[#allocation0] sm:$0x1] %vm7_vm0, %v6_v3  }
   0xe   :  { %17 = vrot.lane.b32.xlu0 %v16_v4, %s38_s9 }
  0x7c   :  { %v12_v5 = vpop.permute.xlu0 %11   ;;  %v24_v6 = vpop.permute.xlu1 %23  }
  0x7d   :  { %14 = vst.msk [vmem:[#allocation0] sm:$0x1] %vm13_vm1, %v12_v5  }
  0x80   :  { %v18_v7 = vpop.permute.xlu0 %17  }
  0x81   :  { %20 = vst.msk [vmem:[#allocation0] sm:$0x1] %vm19_vm2, %v18_v7  }
  0x82   :  { %26 = vst.msk [vmem:[#allocation0] sm:$0x1] %vm25_vm3, %v24_v6  }
  0x89   :  { %v30_v8 = vld [vmem:[#allocation0] sm:$0x1] }
  0x8a   :  { %32 = vst [vmem:[%s56_s1] sm:$0x1] %v30_v8 }

// kernel: decoder_block_forward.1
= control target key start
LH: loop header
LB: loop body
LE: loop exit
PB: predicated region body
PF: predicated region fallthrough
CT: control target
= control target key end

     0   :  { %v321_v1 = vmov 0   ;;  %vm146_vm0 = vcmask 1043456   ;;  %vm142_vm1 = vcmask 588800   ;;  %s429_s0 = inlined_call_operand.vmem [shape: bf16[72,512], index: 0, kind: input, shape index: {}]   ;;  %s430_s2 = inlined_call_operand.vmem [shape: f32[16,1], index: 2, kind: input, shape index: {}]   ;;  %s431_s1 = inlined_call_operand.vmem [shape: bf16[16,72], index: 1, kind: input, shape index: {}]   ;;  %s432_s3 = inlined_call_operand.vmem [shape: f32[16,512], index: 3, kind: output, shape index: {}]  }
   0x1   :  { %v292_v0 = vld [vmem:[%s429_s0 + $0x4] ss:$16 sps:$4 sm:$0xff]   ;;  %191 = vmatprep.mubr.bf16.mxu0 %v321_v1  ;;  %234 = vmatprep.mubr.bf16.mxu1 %v321_v1  ;;  %v294_v2 = vld [vmem:[%s429_s0 + $0xc] ss:$16 sps:$4 sm:$0xff]   ;;  %v296_v3 = vld [vmem:[%s429_s0] ss:$16 sps:$4 sm:$0xff]  }
   0x2   :  { %291 = vset.pattern.permute.xlu0 %v321_v1  ;;  %159 = vmatprep.subr.bf16.mxu0 %v292_v0  ;;  %v297_v4 = vld [vmem:[%s429_s0 + $0x8] ss:$16 sps:$4 sm:$0xff]   ;;  %v298_v5 = vld [vmem:[%s429_s0 + $0x24] ss:$16 sps:$4 sm:$0xff]   ;;  %v300_v6 = vld [vmem:[%s429_s0 + $0x2c] ss:$16 sps:$4 sm:$0xff]  }
   0x3   :  { %202 = vmatprep.subr.bf16.mxu1 %v294_v2  ;;  %160 = vmatpush1.bf16.msra.mxu0 %v296_v3  ;;  %v302_v7 = vld [vmem:[%s429_s0 + $0x20] ss:$16 sps:$4 sm:$0xff]   ;;  %v303_v8 = vld [vmem:[%s429_s0 + $0x28] ss:$16 sps:$4 sm:$0xff]   ;;  %v304_v9 = vld [vmem:[%s429_s0 + $0x44] ss:$16 sps:$4 sm:$0xff]  }
   0x4   :  { %203 = vmatpush1.bf16.msra.mxu1 %v297_v4  ;;  %161 = vmatprep.subr.bf16.mxu0 %v298_v5  ;;  %v306_v10 = vld [vmem:[%s429_s0 + $0x4c] ss:$16 sps:$4 sm:$0xff]   ;;  %v308_v11 = vld [vmem:[%s429_s0 + $0x40] ss:$16 sps:$4 sm:$0xff]   ;;  %v309_v12 = vld [vmem:[%s429_s0 + $0x48] ss:$16 sps:$4 sm:$0xff]  }
   0x5   :  { %204 = vmatprep.subr.bf16.mxu1 %v300_v6  ;;  %v310_v13 = vld [vmem:[%s429_s0 + $0x64] ss:$16 sps:$4 sm:$0xff]   ;;  %v312_v14 = vld [vmem:[%s429_s0 + $0x6c] ss:$16 sps:$4 sm:$0xff]   ;;  %v314_v17 = vld [vmem:[%s429_s0 + $0x60] ss:$16 sps:$4 sm:$0xff]  }
   0x6   :  { %v33_v15 = vld [vmem:[%s429_s0 + $0x80] sm:$0xff]  ;;  %v34_v16 = vld [vmem:[%s429_s0 + $0x88] sm:$0xff] }
   0x7   :  { %162 = vmatpush1.bf16.msra.mxu0 %v302_v7  ;;  %v315_v18 = vld [vmem:[%s429_s0 + $0x68] ss:$16 sps:$4 sm:$0xff]   ;;  %v283_v19 = vcombine.high %v33_v15, %v33_v15  ;;  %v35_v20 = vld [vmem:[%s430_s2] sm:$0xff]  ;;  %v285_v21 = vcombine.high %v34_v16, %v34_v16  ;;  %v282_v22 = vcombine.low %v33_v15, %v33_v15  ;;  %v284_v23 = vcombine.low %v34_v16, %v34_v16 }
   0x8   :  { %205 = vmatpush1.bf16.msra.mxu1 %v303_v8  ;;  %163 = vmatprep.subr.bf16.mxu0 %v304_v9  ;;  %v36_v24 = vld [vmem:[%s430_s2 + $0x8] sm:$0xff]  ;;  %v320_v27 = vld [vmem:[%s431_s1] sm:$0xff]  }
   0x9   :  { %206 = vmatprep.subr.bf16.mxu1 %v306_v10  ;;  %39 = vperm.xlu0 %291, %v35_v20   ;;  %v148_v25 = vsel %vm146_vm0, %v282_v22, 0  ;;  %v154_v26 = vsel %vm146_vm0, %v284_v23, 0 }
   0xb   :  { %164 = vmatpush1.bf16.msra.mxu0 %v308_v11 }
   0xc   :  { %207 = vmatpush1.bf16.msra.mxu1 %v309_v12  ;;  %165 = vmatprep.subr.bf16.mxu0 %v310_v13 }
   0xd   :  { %208 = vmatprep.subr.bf16.mxu1 %v312_v14  ;;  %44 = vperm.xlu0 %291, %v36_v24  }
   0xf   :  { %166 = vmatpush1.bf16.msra.mxu0 %v314_v17 }
  0x10   :  { %209 = vmatpush1.bf16.msra.mxu1 %v315_v18  ;;  %286 = vmatprep.subr.msk.bf16.mxu0 %vm146_vm0, %v283_v19 }
  0x11   :  { %288 = vmatprep.subr.msk.bf16.mxu1 %vm146_vm0, %v285_v21 }
  0x13   :  { %168 = vmatpush1.bf16.msra.mxu0 %v148_v25 }
  0x14   :  { %211 = vmatpush1.bf16.msra.mxu1 %v154_v26 }
  0x16   :  { %287 = vmatmul.mubr.msk.bf16.vlgmr.msra.gmra.mrb[0].mxu0 %vm142_vm1, %v320_v27 }
  0x17   :  { %289 = vmatmul.mubr.msk.bf16.vlgmr.msra.gmra.mrb[0].mxu1 %vm142_vm1, %v320_v27 }
  0x88   :  { %v40_v28 = vpop.permute.xlu0 %39 }
  0x8c   :  { %v45_v29 = vpop.permute.xlu0 %44 }
  0xe9   :  { %v193_v30 = vpop.f32.mrb[0].mxu0 }
  0xea   :  { %v236_v31 = vpop.f32.mrb[0].mxu1  ;;  %v194_v32 = vadd.f32 %v193_v30, %v40_v28  ;;  %v195_v34 = vpop.f32.mrb[1].mxu0 }
  0xeb   :  { %v237_v33 = vadd.f32 %v236_v31, %v40_v28  ;;  %v238_v35 = vpop.f32.mrb[1].mxu1  ;;  %v196_v36 = vadd.f32 %v195_v34, %v40_v28  ;;  %v197_v38 = vpop.f32.mrb[2].mxu0 }
  0xec   :  { %v239_v37 = vadd.f32 %v238_v35, %v40_v28  ;;  %v240_v39 = vpop.f32.mrb[2].mxu1  ;;  %v245_v40 = vmax.f32 %v194_v32, 0.0  ;;  %v198_v42 = vadd.f32 %v197_v38, %v45_v29  ;;  %v199_v44 = vpop.f32.mrb[3].mxu0 }
  0xed   :  { %v247_v41 = vmax.f32 %v237_v33, 0.0  ;;  %v241_v43 = vadd.f32 %v240_v39, %v45_v29  ;;  %v242_v45 = vpop.f32.mrb[3].mxu1  ;;  %v246_v46 = vmax.f32 %v196_v36, 0.0  ;;  %v200_v48 = vadd.f32 %v199_v44, %v45_v29 }
  0xee   :  { %v248_v47 = vmax.f32 %v239_v37, 0.0  ;;  %v243_v49 = vadd.f32 %v242_v45, %v45_v29  ;;  %253 = vst [vmem:[%s432_s3] sm:$0xff] %v245_v40  ;;  %v249_v50 = vmax.f32 %v198_v42, 0.0 }
  0xef   :  { %255 = vst [vmem:[%s432_s3 + $0x10] sm:$0xff] %v247_v41  ;;  %v251_v51 = vmax.f32 %v241_v43, 0.0  ;;  %254 = vst [vmem:[%s432_s3 + $0x8] sm:$0xff] %v246_v46  ;;  %v250_v52 = vmax.f32 %v200_v48, 0.0 }
  0xf0   :  { %256 = vst [vmem:[%s432_s3 + $0x18] sm:$0xff] %v248_v47  ;;  %v252_v53 = vmax.f32 %v243_v49, 0.0  ;;  %257 = vst [vmem:[%s432_s3 + $0x20] sm:$0xff] %v249_v50 }
  0xf1   :  { %259 = vst [vmem:[%s432_s3 + $0x30] sm:$0xff] %v251_v51  ;;  %258 = vst [vmem:[%s432_s3 + $0x28] sm:$0xff] %v250_v52 }
  0xf2   :  { %260 = vst [vmem:[%s432_s3 + $0x38] sm:$0xff] %v252_v53 }

</bundles_post_ra>
